<compile_context>
chip_gen: v7x
topology: tpu7x:2x2x1
jax: 0.10.0
libtpu: 0.0.40
codegen_flags: <defaults>
</compile_context>

<pallas_src>
import functools

import jax
import jax.numpy as jnp
from jax.experimental import pallas as pl
from jax.experimental.pallas import tpu as pltpu


def _encoder_kernel(ctx_ref,
                    w1_ref, b1_ref,
                    w2_ref, b2_ref,
                    w3_ref, b3_ref,
                    wh_ref, bh_ref,
                    out_ref,
                    *, n_ctx, z_dim):
    """ctx_ref: (N, F, b_tile) -- batch on lanes, features on sublanes.

    Activations stay (features, b_tile) throughout: lane-dense vregs, so the
    EUP sigmoid/exp work and the final store carry no lane padding.
    """
    w1 = w1_ref[...]  # (H, F)
    b1 = b1_ref[...]  # (H, 1)   broadcasts along lanes
    w2 = w2_ref[...]  # (H, H)
    b2 = b2_ref[...]
    w3 = w3_ref[...]  # (R, H)
    b3 = b3_ref[...]
    wh = wh_ref[...]  # (2Z, R)  fused [mean | log_var] head
    bh = bh_ref[...]  # (2Z, 1)

    r_dim = w3.shape[0]
    lanes = ctx_ref.shape[2]

    def point_fn(n, acc):
        # One context point for the whole batch tile: (F, b_tile).
        c = ctx_ref[n].astype(jnp.float32)
        h = jax.nn.sigmoid(jnp.dot(w1, c, preferred_element_type=jnp.float32) + b1)
        h = jax.nn.sigmoid(jnp.dot(w2, h, preferred_element_type=jnp.float32) + b2)
        r = jax.nn.sigmoid(jnp.dot(w3, h, preferred_element_type=jnp.float32) + b3)
        return acc + r

    acc = jnp.zeros((r_dim, lanes), jnp.float32)
    if n_ctx <= 32:
        # Static unroll over the (small) context set; each iteration reads a
        # (F, b_tile) slice off the leading axis of the block (cheap offset).
        for n in range(n_ctx):
            acc = point_fn(n, acc)
    else:
        acc = jax.lax.fori_loop(0, n_ctx, point_fn, acc)

    # Order-invariant aggregation: mean over the N context points.
    r_bar = acc * (1.0 / n_ctx)                                   # (R, b_tile)

    # Fused heads: rows [0, Z) = latent mean, rows [Z, 2Z) = log_var.
    heads = jnp.dot(wh, r_bar, preferred_element_type=jnp.float32) + bh

    # std = exp(0.5*log_var) applied only to the log_var rows via a sublane
    # mask.  NOTE: this is a *select*, not an arithmetic blend -- exp() is
    # also evaluated on the mean rows but those lanes are discarded, so a
    # huge mean magnitude cannot leak inf/nan into the result.  The row
    # ordering [mean ; log_var] must stay in sync with the wrapper slices.
    rows = jax.lax.broadcasted_iota(jnp.int32, heads.shape, 0)
    out = jnp.where(rows < z_dim, heads, jnp.exp(0.5 * heads))
    out_ref[...] = out.astype(out_ref.dtype)


def _choose_b_tile(B, cap=512):
    """Pick (b_tile, b_pad) for the batch-on-lanes layout.

    b_tile is the lane width of every block, so it must be a multiple of 128
    unless a single block covers the whole (padded) batch.  Preferences:
      * >= 2 grid steps once B > 128, so dimension_semantics=("parallel",)
        keeps both v7x TensorCores busy (no effect on v5e/v6e);
      * tiles as large as possible up to `cap` lanes to amortize the ~0.35us
        per-grid-step pipeline overhead;
      * an even split when it divides cleanly.
    Batch padding is cheap: it fuses into the same XLA materialization that
    builds the transposed input, so no standalone copy of x / y is made.
    """
    if B <= 128:
        return B, B                       # single full-extent block, no padding
    n128 = pl.cdiv(B, 128)                # 128-lane groups after padding
    b_pad = n128 * 128
    t_max = max(1, min(cap // 128, n128 - 1))   # t < n128  =>  >= 2 grid steps
    exact = [t for t in range(1, t_max + 1) if n128 % t == 0]
    t = max(exact) if exact else t_max
    return t * 128, b_pad


def encoder_forward(x, y, params, *, b_tile=None):
    """x: (B, N, x_dim), y: (B, N, y_dim). Returns (mean, std), each (B, 1, z_dim)."""
    B, N, x_dim = x.shape
    y_dim = y.shape[2]
    F = x_dim + y_dim
    Z = params["wm"].shape[1]

    # --- host-side weight prep (tiny, constant-size) -------------------------
    # Weights are stored (in, out); transpose them so the kernel left-multiplies
    # lane-dense (features, batch) activations.  The two heads are fused.
    w1T = params["w1"].T                                            # (H, F)
    w2T = params["w2"].T                                            # (H, H)
    w3T = params["w3"].T                                            # (R, H)
    whT = jnp.concatenate([params["wm"], params["ws"]], axis=1).T   # (2Z, R)
    b1c = params["b1"].reshape(-1, 1)
    b2c = params["b2"].reshape(-1, 1)
    b3c = params["b3"].reshape(-1, 1)
    bhc = jnp.concatenate([params["bm"], params["bs"]], axis=1).reshape(-1, 1)

    # --- batch tiling ---------------------------------------------------------
    if b_tile is None:
        b_tile, b_pad = _choose_b_tile(B)
    else:
        if b_tile < B and b_tile % 128 != 0:
            raise ValueError("explicit b_tile must be a multiple of 128 (lane "
                             "width) unless it covers the whole batch")
        b_pad = pl.cdiv(B, b_tile) * b_tile
    grid = (b_pad // b_tile,)

    # --- input relayout: one fused concat + pad + transpose -------------------
    # (B, N, x_dim)+(B, N, y_dim) -> (N, F, B_pad); the kernel then streams
    # lane-dense blocks (inner HBM granule = 4*b_tile bytes, not 12B/4B).
    ctx = jnp.concatenate([x, y], axis=2)                 # (B, N, F)
    if b_pad != B:
        ctx = jnp.pad(ctx, ((0, b_pad - B), (0, 0), (0, 0)))
    ctxT = jnp.transpose(ctx, (1, 2, 0))                  # (N, F, B_pad)

    weight_args = (w1T, b1c, w2T, b2c, w3T, b3c, whT, bhc)

    in_specs = (
        [pl.BlockSpec((N, F, b_tile), lambda i: (0, 0, i))]
        # Full, constant-index weight blocks: VMEM-resident, fetched once.
        + [pl.BlockSpec(w.shape, lambda i: (0, 0)) for w in weight_args]
    )
    # Lane-dense output: last dim is the batch axis, single store per step.
    out_specs = pl.BlockSpec((2 * Z, b_tile), lambda i: (0, i))
    out_shape = jax.ShapeDtypeStruct((2 * Z, b_pad), jnp.float32)

    kernel = functools.partial(_encoder_kernel, n_ctx=N, z_dim=Z)

    out = pl.pallas_call(
        kernel,
        out_shape=out_shape,
        grid=grid,
        in_specs=in_specs,
        out_specs=out_specs,
        compiler_params=pltpu.CompilerParams(
            dimension_semantics=("parallel",),
            vmem_limit_bytes=32 * 1024 * 1024),   # working set is <1 MiB/step
    )(ctxT, *weight_args)

    # Rows [0, Z) = mean, rows [Z, 2Z) = std (contract shared with the kernel).
    mean = out[:Z, :B].T.reshape(B, 1, Z)
    std = out[Z:, :B].T.reshape(B, 1, Z)
    return mean, std


def init_encoder_params(key, input_size, r_dim, z_dim, hidden_size=10):
    """Synthetic init mirroring the PyTorch module's shapes.

    Linear weights use Xavier-normal (as in Encoder.init_weights); biases use
    uniform(-1/sqrt(fan_in), 1/sqrt(fan_in)) like PyTorch's default Linear
    bias.  Weights stored transposed: (in_features, out_features).
    """
    def linear(k, fan_in, fan_out):
        kw, kb = jax.random.split(k)
        std = (2.0 / (fan_in + fan_out)) ** 0.5
        w = std * jax.random.normal(kw, (fan_in, fan_out), dtype=jnp.float32)
        bound = 1.0 / (fan_in ** 0.5)
        b = jax.random.uniform(kb, (1, fan_out), minval=-bound, maxval=bound,
                               dtype=jnp.float32)
        return w, b

    keys = jax.random.split(key, 5)
    w1, b1 = linear(keys[0], input_size, hidden_size)
    w2, b2 = linear(keys[1], hidden_size, hidden_size)
    w3, b3 = linear(keys[2], hidden_size, r_dim)
    wm, bm = linear(keys[3], r_dim, z_dim)
    ws, bs = linear(keys[4], r_dim, z_dim)
    return dict(w1=w1, b1=b1, w2=w2, b2=b2, w3=w3, b3=b3,
                wm=wm, bm=bm, ws=ws, bs=bs)


def encoder_reference(x, y, params):
    """Pure-JAX reference for validation (mirrors the PyTorch forward)."""
    ctx = jnp.concatenate([x, y], axis=2)
    h = jax.nn.sigmoid(ctx @ params["w1"] + params["b1"])
    h = jax.nn.sigmoid(h @ params["w2"] + params["b2"])
    r = jax.nn.sigmoid(h @ params["w3"] + params["b3"])
    rep = jnp.mean(r, axis=1)[:, None, :]
    mean = rep @ params["wm"] + params["bm"]
    log_var = rep @ params["ws"] + params["bs"]
    return mean, jnp.exp(0.5 * log_var)


if __name__ == "__main__":
    # Shapes consistent with the module: 8 context points, x_dim=3, y_dim=1
    # -> input_size=4, hidden=10, r_dim=5, z_dim=3.
    N, X_DIM, Y_DIM = 8, 3, 1
    INPUT_SIZE, HIDDEN, R_DIM, Z_DIM = X_DIM + Y_DIM, 10, 5, 3

    key = jax.random.PRNGKey(0)
    kx, ky, kp = jax.random.split(key, 3)
    params = init_encoder_params(kp, INPUT_SIZE, R_DIM, Z_DIM, HIDDEN)

    # Check 1: tiny batch (single full-extent block, grid=(1,)).
    B = 2
    x = jax.random.normal(kx, (B, N, X_DIM), dtype=jnp.float32)
    y = jax.random.normal(ky, (B, N, Y_DIM), dtype=jnp.float32)
    mean, std = encoder_forward(x, y, params)
    jax.block_until_ready((mean, std))
    ref_mean, ref_std = encoder_reference(x, y, params)
    assert mean.shape == (B, 1, Z_DIM) and std.shape == (B, 1, Z_DIM)
    assert jnp.allclose(mean, ref_mean, atol=1e-5, rtol=1e-5)
    assert jnp.allclose(std, ref_std, atol=1e-5, rtol=1e-5)

    # Check 2: multi-step grid with fused batch padding
    # (B=300 -> b_tile=128, b_pad=384, grid=(3,), parallel over steps).
    B2 = 300
    kx2, ky2 = jax.random.split(jax.random.PRNGKey(1))
    x2 = jax.random.normal(kx2, (B2, N, X_DIM), dtype=jnp.float32)
    y2 = jax.random.normal(ky2, (B2, N, Y_DIM), dtype=jnp.float32)
    mean2, std2 = encoder_forward(x2, y2, params)
    jax.block_until_ready((mean2, std2))
    ref_mean2, ref_std2 = encoder_reference(x2, y2, params)
    assert jnp.allclose(mean2, ref_mean2, atol=1e-5, rtol=1e-5)
    assert jnp.allclose(std2, ref_std2, atol=1e-5, rtol=1e-5)

    # Check 3: explicit larger tile (b_tile=256 -> b_pad=512, grid=(2,)).
    mean3, std3 = encoder_forward(x2, y2, params, b_tile=256)
    jax.block_until_ready((mean3, std3))
    assert jnp.allclose(mean3, ref_mean2, atol=1e-5, rtol=1e-5)
    assert jnp.allclose(std3, ref_std2, atol=1e-5, rtol=1e-5)

    print("KERNEL_OK")
</pallas_src>

<mosaic_0001>
module attributes {stable_mosaic.version = 11 : i64} {
  func.func @_encoder_kernel(%arg0: i32, %arg1: memref<8x4x2xf32, #tpu.memory_space<vmem>>, %arg2: memref<10x4xf32, #tpu.memory_space<vmem>>, %arg3: memref<10x1xf32, #tpu.memory_space<vmem>>, %arg4: memref<10x10xf32, #tpu.memory_space<vmem>>, %arg5: memref<10x1xf32, #tpu.memory_space<vmem>>, %arg6: memref<5x10xf32, #tpu.memory_space<vmem>>, %arg7: memref<5x1xf32, #tpu.memory_space<vmem>>, %arg8: memref<6x5xf32, #tpu.memory_space<vmem>>, %arg9: memref<6x1xf32, #tpu.memory_space<vmem>>, %arg10: memref<6x2xf32, #tpu.memory_space<vmem>>) attributes {dimension_semantics = [#tpu.dimension_semantics<parallel>], iteration_bounds = array<i64: 1>, scalar_prefetch = 0 : i64, scratch_operands = 0 : i64, tpu.core_type = #tpu.core_type<tc>, window_params = [{transform_indices = @transform_0, window_bounds = array<i64: 8, 4, 2>}, {pipeline_mode = #tpu.pipeline_mode<synchronous>, transform_indices = @transform_1, window_bounds = array<i64: 10, 4>}, {pipeline_mode = #tpu.pipeline_mode<synchronous>, transform_indices = @transform_2, window_bounds = array<i64: 10, 1>}, {pipeline_mode = #tpu.pipeline_mode<synchronous>, transform_indices = @transform_3, window_bounds = array<i64: 10, 10>}, {pipeline_mode = #tpu.pipeline_mode<synchronous>, transform_indices = @transform_4, window_bounds = array<i64: 10, 1>}, {pipeline_mode = #tpu.pipeline_mode<synchronous>, transform_indices = @transform_5, window_bounds = array<i64: 5, 10>}, {pipeline_mode = #tpu.pipeline_mode<synchronous>, transform_indices = @transform_6, window_bounds = array<i64: 5, 1>}, {pipeline_mode = #tpu.pipeline_mode<synchronous>, transform_indices = @transform_7, window_bounds = array<i64: 6, 5>}, {pipeline_mode = #tpu.pipeline_mode<synchronous>, transform_indices = @transform_8, window_bounds = array<i64: 6, 1>}, {transform_indices = @transform_9, window_bounds = array<i64: 6, 2>}]} {
    %c0 = arith.constant 0 : index
    %c0_0 = arith.constant 0 : index
    %0 = vector.load %arg2[%c0, %c0_0] : memref<10x4xf32, #tpu.memory_space<vmem>>, vector<10x4xf32>
    %c0_1 = arith.constant 0 : index
    %c0_2 = arith.constant 0 : index
    %1 = vector.load %arg3[%c0_1, %c0_2] : memref<10x1xf32, #tpu.memory_space<vmem>>, vector<10x1xf32>
    %c0_3 = arith.constant 0 : index
    %c0_4 = arith.constant 0 : index
    %2 = vector.load %arg4[%c0_3, %c0_4] : memref<10x10xf32, #tpu.memory_space<vmem>>, vector<10x10xf32>
    %c0_5 = arith.constant 0 : index
    %c0_6 = arith.constant 0 : index
    %3 = vector.load %arg5[%c0_5, %c0_6] : memref<10x1xf32, #tpu.memory_space<vmem>>, vector<10x1xf32>
    %c0_7 = arith.constant 0 : index
    %c0_8 = arith.constant 0 : index
    %4 = vector.load %arg6[%c0_7, %c0_8] : memref<5x10xf32, #tpu.memory_space<vmem>>, vector<5x10xf32>
    %c0_9 = arith.constant 0 : index
    %c0_10 = arith.constant 0 : index
    %5 = vector.load %arg7[%c0_9, %c0_10] : memref<5x1xf32, #tpu.memory_space<vmem>>, vector<5x1xf32>
    %c0_11 = arith.constant 0 : index
    %c0_12 = arith.constant 0 : index
    %6 = vector.load %arg8[%c0_11, %c0_12] : memref<6x5xf32, #tpu.memory_space<vmem>>, vector<6x5xf32>
    %c0_13 = arith.constant 0 : index
    %c0_14 = arith.constant 0 : index
    %7 = vector.load %arg9[%c0_13, %c0_14] : memref<6x1xf32, #tpu.memory_space<vmem>>, vector<6x1xf32>
    %cst = arith.constant 0.000000e+00 : f32
    %8 = vector.broadcast %cst : f32 to vector<5x2xf32>
    %c0_15 = arith.constant 0 : index
    %c0_16 = arith.constant 0 : index
    %c0_17 = arith.constant 0 : index
    %9 = vector.load %arg1[%c0_15, %c0_16, %c0_17] : memref<8x4x2xf32, #tpu.memory_space<vmem>>, vector<1x4x2xf32>
    %10 = vector.shape_cast %9 : vector<1x4x2xf32> to vector<4x2xf32>
    %cst_18 = arith.constant dense<0.000000e+00> : vector<10x2xf32>
    %11 = tpu.matmul %0, %10, %cst_18 {dimension_numbers = #tpu.dot_dimension_numbers<[1], [0], [0], [1], [0, 0, 1, 1], [], []>} : vector<10x4xf32>, vector<4x2xf32>, vector<10x2xf32> -> vector<10x2xf32>
    %12 = vector.broadcast %1 : vector<10x1xf32> to vector<10x2xf32>
    %13 = arith.addf %11, %12 : vector<10x2xf32>
    %14 = arith.negf %13 : vector<10x2xf32>
    %15 = math.exp %14 : vector<10x2xf32>
    %cst_19 = arith.constant 1.000000e+00 : f32
    %16 = vector.broadcast %cst_19 : f32 to vector<10x2xf32>
    %17 = arith.addf %16, %15 : vector<10x2xf32>
    %18 = arith.divf %16, %17 : vector<10x2xf32>
    %cst_20 = arith.constant dense<0.000000e+00> : vector<10x2xf32>
    %19 = tpu.matmul %2, %18, %cst_20 {dimension_numbers = #tpu.dot_dimension_numbers<[1], [0], [0], [1], [0, 0, 1, 1], [], []>} : vector<10x10xf32>, vector<10x2xf32>, vector<10x2xf32> -> vector<10x2xf32>
    %20 = vector.broadcast %3 : vector<10x1xf32> to vector<10x2xf32>
    %21 = arith.addf %19, %20 : vector<10x2xf32>
    %22 = arith.negf %21 : vector<10x2xf32>
    %23 = math.exp %22 : vector<10x2xf32>
    %cst_21 = arith.constant 1.000000e+00 : f32
    %24 = vector.broadcast %cst_21 : f32 to vector<10x2xf32>
    %25 = arith.addf %24, %23 : vector<10x2xf32>
    %26 = arith.divf %24, %25 : vector<10x2xf32>
    %cst_22 = arith.constant dense<0.000000e+00> : vector<5x2xf32>
    %27 = tpu.matmul %4, %26, %cst_22 {dimension_numbers = #tpu.dot_dimension_numbers<[1], [0], [0], [1], [0, 0, 1, 1], [], []>} : vector<5x10xf32>, vector<10x2xf32>, vector<5x2xf32> -> vector<5x2xf32>
    %28 = vector.broadcast %5 : vector<5x1xf32> to vector<5x2xf32>
    %29 = arith.addf %27, %28 : vector<5x2xf32>
    %30 = arith.negf %29 : vector<5x2xf32>
    %31 = math.exp %30 : vector<5x2xf32>
    %cst_23 = arith.constant 1.000000e+00 : f32
    %32 = vector.broadcast %cst_23 : f32 to vector<5x2xf32>
    %33 = arith.addf %32, %31 : vector<5x2xf32>
    %34 = arith.divf %32, %33 : vector<5x2xf32>
    %35 = arith.addf %8, %34 : vector<5x2xf32>
    %c1 = arith.constant 1 : index
    %c0_24 = arith.constant 0 : index
    %c0_25 = arith.constant 0 : index
    %36 = vector.load %arg1[%c1, %c0_24, %c0_25] : memref<8x4x2xf32, #tpu.memory_space<vmem>>, vector<1x4x2xf32>
    %37 = vector.shape_cast %36 : vector<1x4x2xf32> to vector<4x2xf32>
    %cst_26 = arith.constant dense<0.000000e+00> : vector<10x2xf32>
    %38 = tpu.matmul %0, %37, %cst_26 {dimension_numbers = #tpu.dot_dimension_numbers<[1], [0], [0], [1], [0, 0, 1, 1], [], []>} : vector<10x4xf32>, vector<4x2xf32>, vector<10x2xf32> -> vector<10x2xf32>
    %39 = vector.broadcast %1 : vector<10x1xf32> to vector<10x2xf32>
    %40 = arith.addf %38, %39 : vector<10x2xf32>
    %41 = arith.negf %40 : vector<10x2xf32>
    %42 = math.exp %41 : vector<10x2xf32>
    %cst_27 = arith.constant 1.000000e+00 : f32
    %43 = vector.broadcast %cst_27 : f32 to vector<10x2xf32>
    %44 = arith.addf %43, %42 : vector<10x2xf32>
    %45 = arith.divf %43, %44 : vector<10x2xf32>
    %cst_28 = arith.constant dense<0.000000e+00> : vector<10x2xf32>
    %46 = tpu.matmul %2, %45, %cst_28 {dimension_numbers = #tpu.dot_dimension_numbers<[1], [0], [0], [1], [0, 0, 1, 1], [], []>} : vector<10x10xf32>, vector<10x2xf32>, vector<10x2xf32> -> vector<10x2xf32>
    %47 = vector.broadcast %3 : vector<10x1xf32> to vector<10x2xf32>
    %48 = arith.addf %46, %47 : vector<10x2xf32>
    %49 = arith.negf %48 : vector<10x2xf32>
    %50 = math.exp %49 : vector<10x2xf32>
    %cst_29 = arith.constant 1.000000e+00 : f32
    %51 = vector.broadcast %cst_29 : f32 to vector<10x2xf32>
    %52 = arith.addf %51, %50 : vector<10x2xf32>
    %53 = arith.divf %51, %52 : vector<10x2xf32>
    %cst_30 = arith.constant dense<0.000000e+00> : vector<5x2xf32>
    %54 = tpu.matmul %4, %53, %cst_30 {dimension_numbers = #tpu.dot_dimension_numbers<[1], [0], [0], [1], [0, 0, 1, 1], [], []>} : vector<5x10xf32>, vector<10x2xf32>, vector<5x2xf32> -> vector<5x2xf32>
    %55 = vector.broadcast %5 : vector<5x1xf32> to vector<5x2xf32>
    %56 = arith.addf %54, %55 : vector<5x2xf32>
    %57 = arith.negf %56 : vector<5x2xf32>
    %58 = math.exp %57 : vector<5x2xf32>
    %cst_31 = arith.constant 1.000000e+00 : f32
    %59 = vector.broadcast %cst_31 : f32 to vector<5x2xf32>
    %60 = arith.addf %59, %58 : vector<5x2xf32>
    %61 = arith.divf %59, %60 : vector<5x2xf32>
    %62 = arith.addf %35, %61 : vector<5x2xf32>
    %c2 = arith.constant 2 : index
    %c0_32 = arith.constant 0 : index
    %c0_33 = arith.constant 0 : index
    %63 = vector.load %arg1[%c2, %c0_32, %c0_33] : memref<8x4x2xf32, #tpu.memory_space<vmem>>, vector<1x4x2xf32>
    %64 = vector.shape_cast %63 : vector<1x4x2xf32> to vector<4x2xf32>
    %cst_34 = arith.constant dense<0.000000e+00> : vector<10x2xf32>
    %65 = tpu.matmul %0, %64, %cst_34 {dimension_numbers = #tpu.dot_dimension_numbers<[1], [0], [0], [1], [0, 0, 1, 1], [], []>} : vector<10x4xf32>, vector<4x2xf32>, vector<10x2xf32> -> vector<10x2xf32>
    %66 = vector.broadcast %1 : vector<10x1xf32> to vector<10x2xf32>
    %67 = arith.addf %65, %66 : vector<10x2xf32>
    %68 = arith.negf %67 : vector<10x2xf32>
    %69 = math.exp %68 : vector<10x2xf32>
    %cst_35 = arith.constant 1.000000e+00 : f32
    %70 = vector.broadcast %cst_35 : f32 to vector<10x2xf32>
    %71 = arith.addf %70, %69 : vector<10x2xf32>
    %72 = arith.divf %70, %71 : vector<10x2xf32>
    %cst_36 = arith.constant dense<0.000000e+00> : vector<10x2xf32>
    %73 = tpu.matmul %2, %72, %cst_36 {dimension_numbers = #tpu.dot_dimension_numbers<[1], [0], [0], [1], [0, 0, 1, 1], [], []>} : vector<10x10xf32>, vector<10x2xf32>, vector<10x2xf32> -> vector<10x2xf32>
    %74 = vector.broadcast %3 : vector<10x1xf32> to vector<10x2xf32>
    %75 = arith.addf %73, %74 : vector<10x2xf32>
    %76 = arith.negf %75 : vector<10x2xf32>
    %77 = math.exp %76 : vector<10x2xf32>
    %cst_37 = arith.constant 1.000000e+00 : f32
    %78 = vector.broadcast %cst_37 : f32 to vector<10x2xf32>
    %79 = arith.addf %78, %77 : vector<10x2xf32>
    %80 = arith.divf %78, %79 : vector<10x2xf32>
    %cst_38 = arith.constant dense<0.000000e+00> : vector<5x2xf32>
    %81 = tpu.matmul %4, %80, %cst_38 {dimension_numbers = #tpu.dot_dimension_numbers<[1], [0], [0], [1], [0, 0, 1, 1], [], []>} : vector<5x10xf32>, vector<10x2xf32>, vector<5x2xf32> -> vector<5x2xf32>
    %82 = vector.broadcast %5 : vector<5x1xf32> to vector<5x2xf32>
    %83 = arith.addf %81, %82 : vector<5x2xf32>
    %84 = arith.negf %83 : vector<5x2xf32>
    %85 = math.exp %84 : vector<5x2xf32>
    %cst_39 = arith.constant 1.000000e+00 : f32
    %86 = vector.broadcast %cst_39 : f32 to vector<5x2xf32>
    %87 = arith.addf %86, %85 : vector<5x2xf32>
    %88 = arith.divf %86, %87 : vector<5x2xf32>
    %89 = arith.addf %62, %88 : vector<5x2xf32>
    %c3 = arith.constant 3 : index
    %c0_40 = arith.constant 0 : index
    %c0_41 = arith.constant 0 : index
    %90 = vector.load %arg1[%c3, %c0_40, %c0_41] : memref<8x4x2xf32, #tpu.memory_space<vmem>>, vector<1x4x2xf32>
    %91 = vector.shape_cast %90 : vector<1x4x2xf32> to vector<4x2xf32>
    %cst_42 = arith.constant dense<0.000000e+00> : vector<10x2xf32>
    %92 = tpu.matmul %0, %91, %cst_42 {dimension_numbers = #tpu.dot_dimension_numbers<[1], [0], [0], [1], [0, 0, 1, 1], [], []>} : vector<10x4xf32>, vector<4x2xf32>, vector<10x2xf32> -> vector<10x2xf32>
    %93 = vector.broadcast %1 : vector<10x1xf32> to vector<10x2xf32>
    %94 = arith.addf %92, %93 : vector<10x2xf32>
    %95 = arith.negf %94 : vector<10x2xf32>
    %96 = math.exp %95 : vector<10x2xf32>
    %cst_43 = arith.constant 1.000000e+00 : f32
    %97 = vector.broadcast %cst_43 : f32 to vector<10x2xf32>
    %98 = arith.addf %97, %96 : vector<10x2xf32>
    %99 = arith.divf %97, %98 : vector<10x2xf32>
    %cst_44 = arith.constant dense<0.000000e+00> : vector<10x2xf32>
    %100 = tpu.matmul %2, %99, %cst_44 {dimension_numbers = #tpu.dot_dimension_numbers<[1], [0], [0], [1], [0, 0, 1, 1], [], []>} : vector<10x10xf32>, vector<10x2xf32>, vector<10x2xf32> -> vector<10x2xf32>
    %101 = vector.broadcast %3 : vector<10x1xf32> to vector<10x2xf32>
    %102 = arith.addf %100, %101 : vector<10x2xf32>
    %103 = arith.negf %102 : vector<10x2xf32>
    %104 = math.exp %103 : vector<10x2xf32>
    %cst_45 = arith.constant 1.000000e+00 : f32
    %105 = vector.broadcast %cst_45 : f32 to vector<10x2xf32>
    %106 = arith.addf %105, %104 : vector<10x2xf32>
    %107 = arith.divf %105, %106 : vector<10x2xf32>
    %cst_46 = arith.constant dense<0.000000e+00> : vector<5x2xf32>
    %108 = tpu.matmul %4, %107, %cst_46 {dimension_numbers = #tpu.dot_dimension_numbers<[1], [0], [0], [1], [0, 0, 1, 1], [], []>} : vector<5x10xf32>, vector<10x2xf32>, vector<5x2xf32> -> vector<5x2xf32>
    %109 = vector.broadcast %5 : vector<5x1xf32> to vector<5x2xf32>
    %110 = arith.addf %108, %109 : vector<5x2xf32>
    %111 = arith.negf %110 : vector<5x2xf32>
    %112 = math.exp %111 : vector<5x2xf32>
    %cst_47 = arith.constant 1.000000e+00 : f32
    %113 = vector.broadcast %cst_47 : f32 to vector<5x2xf32>
    %114 = arith.addf %113, %112 : vector<5x2xf32>
    %115 = arith.divf %113, %114 : vector<5x2xf32>
    %116 = arith.addf %89, %115 : vector<5x2xf32>
    %c4 = arith.constant 4 : index
    %c0_48 = arith.constant 0 : index
    %c0_49 = arith.constant 0 : index
    %117 = vector.load %arg1[%c4, %c0_48, %c0_49] : memref<8x4x2xf32, #tpu.memory_space<vmem>>, vector<1x4x2xf32>
    %118 = vector.shape_cast %117 : vector<1x4x2xf32> to vector<4x2xf32>
    %cst_50 = arith.constant dense<0.000000e+00> : vector<10x2xf32>
    %119 = tpu.matmul %0, %118, %cst_50 {dimension_numbers = #tpu.dot_dimension_numbers<[1], [0], [0], [1], [0, 0, 1, 1], [], []>} : vector<10x4xf32>, vector<4x2xf32>, vector<10x2xf32> -> vector<10x2xf32>
    %120 = vector.broadcast %1 : vector<10x1xf32> to vector<10x2xf32>
    %121 = arith.addf %119, %120 : vector<10x2xf32>
    %122 = arith.negf %121 : vector<10x2xf32>
    %123 = math.exp %122 : vector<10x2xf32>
    %cst_51 = arith.constant 1.000000e+00 : f32
    %124 = vector.broadcast %cst_51 : f32 to vector<10x2xf32>
    %125 = arith.addf %124, %123 : vector<10x2xf32>
    %126 = arith.divf %124, %125 : vector<10x2xf32>
    %cst_52 = arith.constant dense<0.000000e+00> : vector<10x2xf32>
    %127 = tpu.matmul %2, %126, %cst_52 {dimension_numbers = #tpu.dot_dimension_numbers<[1], [0], [0], [1], [0, 0, 1, 1], [], []>} : vector<10x10xf32>, vector<10x2xf32>, vector<10x2xf32> -> vector<10x2xf32>
    %128 = vector.broadcast %3 : vector<10x1xf32> to vector<10x2xf32>
    %129 = arith.addf %127, %128 : vector<10x2xf32>
    %130 = arith.negf %129 : vector<10x2xf32>
    %131 = math.exp %130 : vector<10x2xf32>
    %cst_53 = arith.constant 1.000000e+00 : f32
    %132 = vector.broadcast %cst_53 : f32 to vector<10x2xf32>
    %133 = arith.addf %132, %131 : vector<10x2xf32>
    %134 = arith.divf %132, %133 : vector<10x2xf32>
    %cst_54 = arith.constant dense<0.000000e+00> : vector<5x2xf32>
    %135 = tpu.matmul %4, %134, %cst_54 {dimension_numbers = #tpu.dot_dimension_numbers<[1], [0], [0], [1], [0, 0, 1, 1], [], []>} : vector<5x10xf32>, vector<10x2xf32>, vector<5x2xf32> -> vector<5x2xf32>
    %136 = vector.broadcast %5 : vector<5x1xf32> to vector<5x2xf32>
    %137 = arith.addf %135, %136 : vector<5x2xf32>
    %138 = arith.negf %137 : vector<5x2xf32>
    %139 = math.exp %138 : vector<5x2xf32>
    %cst_55 = arith.constant 1.000000e+00 : f32
    %140 = vector.broadcast %cst_55 : f32 to vector<5x2xf32>
    %141 = arith.addf %140, %139 : vector<5x2xf32>
    %142 = arith.divf %140, %141 : vector<5x2xf32>
    %143 = arith.addf %116, %142 : vector<5x2xf32>
    %c5 = arith.constant 5 : index
    %c0_56 = arith.constant 0 : index
    %c0_57 = arith.constant 0 : index
    %144 = vector.load %arg1[%c5, %c0_56, %c0_57] : memref<8x4x2xf32, #tpu.memory_space<vmem>>, vector<1x4x2xf32>
    %145 = vector.shape_cast %144 : vector<1x4x2xf32> to vector<4x2xf32>
    %cst_58 = arith.constant dense<0.000000e+00> : vector<10x2xf32>
    %146 = tpu.matmul %0, %145, %cst_58 {dimension_numbers = #tpu.dot_dimension_numbers<[1], [0], [0], [1], [0, 0, 1, 1], [], []>} : vector<10x4xf32>, vector<4x2xf32>, vector<10x2xf32> -> vector<10x2xf32>
    %147 = vector.broadcast %1 : vector<10x1xf32> to vector<10x2xf32>
    %148 = arith.addf %146, %147 : vector<10x2xf32>
    %149 = arith.negf %148 : vector<10x2xf32>
    %150 = math.exp %149 : vector<10x2xf32>
    %cst_59 = arith.constant 1.000000e+00 : f32
    %151 = vector.broadcast %cst_59 : f32 to vector<10x2xf32>
    %152 = arith.addf %151, %150 : vector<10x2xf32>
    %153 = arith.divf %151, %152 : vector<10x2xf32>
    %cst_60 = arith.constant dense<0.000000e+00> : vector<10x2xf32>
    %154 = tpu.matmul %2, %153, %cst_60 {dimension_numbers = #tpu.dot_dimension_numbers<[1], [0], [0], [1], [0, 0, 1, 1], [], []>} : vector<10x10xf32>, vector<10x2xf32>, vector<10x2xf32> -> vector<10x2xf32>
    %155 = vector.broadcast %3 : vector<10x1xf32> to vector<10x2xf32>
    %156 = arith.addf %154, %155 : vector<10x2xf32>
    %157 = arith.negf %156 : vector<10x2xf32>
    %158 = math.exp %157 : vector<10x2xf32>
    %cst_61 = arith.constant 1.000000e+00 : f32
    %159 = vector.broadcast %cst_61 : f32 to vector<10x2xf32>
    %160 = arith.addf %159, %158 : vector<10x2xf32>
    %161 = arith.divf %159, %160 : vector<10x2xf32>
    %cst_62 = arith.constant dense<0.000000e+00> : vector<5x2xf32>
    %162 = tpu.matmul %4, %161, %cst_62 {dimension_numbers = #tpu.dot_dimension_numbers<[1], [0], [0], [1], [0, 0, 1, 1], [], []>} : vector<5x10xf32>, vector<10x2xf32>, vector<5x2xf32> -> vector<5x2xf32>
    %163 = vector.broadcast %5 : vector<5x1xf32> to vector<5x2xf32>
    %164 = arith.addf %162, %163 : vector<5x2xf32>
    %165 = arith.negf %164 : vector<5x2xf32>
    %166 = math.exp %165 : vector<5x2xf32>
    %cst_63 = arith.constant 1.000000e+00 : f32
    %167 = vector.broadcast %cst_63 : f32 to vector<5x2xf32>
    %168 = arith.addf %167, %166 : vector<5x2xf32>
    %169 = arith.divf %167, %168 : vector<5x2xf32>
    %170 = arith.addf %143, %169 : vector<5x2xf32>
    %c6 = arith.constant 6 : index
    %c0_64 = arith.constant 0 : index
    %c0_65 = arith.constant 0 : index
    %171 = vector.load %arg1[%c6, %c0_64, %c0_65] : memref<8x4x2xf32, #tpu.memory_space<vmem>>, vector<1x4x2xf32>
    %172 = vector.shape_cast %171 : vector<1x4x2xf32> to vector<4x2xf32>
    %cst_66 = arith.constant dense<0.000000e+00> : vector<10x2xf32>
    %173 = tpu.matmul %0, %172, %cst_66 {dimension_numbers = #tpu.dot_dimension_numbers<[1], [0], [0], [1], [0, 0, 1, 1], [], []>} : vector<10x4xf32>, vector<4x2xf32>, vector<10x2xf32> -> vector<10x2xf32>
    %174 = vector.broadcast %1 : vector<10x1xf32> to vector<10x2xf32>
    %175 = arith.addf %173, %174 : vector<10x2xf32>
    %176 = arith.negf %175 : vector<10x2xf32>
    %177 = math.exp %176 : vector<10x2xf32>
    %cst_67 = arith.constant 1.000000e+00 : f32
    %178 = vector.broadcast %cst_67 : f32 to vector<10x2xf32>
    %179 = arith.addf %178, %177 : vector<10x2xf32>
    %180 = arith.divf %178, %179 : vector<10x2xf32>
    %cst_68 = arith.constant dense<0.000000e+00> : vector<10x2xf32>
    %181 = tpu.matmul %2, %180, %cst_68 {dimension_numbers = #tpu.dot_dimension_numbers<[1], [0], [0], [1], [0, 0, 1, 1], [], []>} : vector<10x10xf32>, vector<10x2xf32>, vector<10x2xf32> -> vector<10x2xf32>
    %182 = vector.broadcast %3 : vector<10x1xf32> to vector<10x2xf32>
    %183 = arith.addf %181, %182 : vector<10x2xf32>
    %184 = arith.negf %183 : vector<10x2xf32>
    %185 = math.exp %184 : vector<10x2xf32>
    %cst_69 = arith.constant 1.000000e+00 : f32
    %186 = vector.broadcast %cst_69 : f32 to vector<10x2xf32>
    %187 = arith.addf %186, %185 : vector<10x2xf32>
    %188 = arith.divf %186, %187 : vector<10x2xf32>
    %cst_70 = arith.constant dense<0.000000e+00> : vector<5x2xf32>
    %189 = tpu.matmul %4, %188, %cst_70 {dimension_numbers = #tpu.dot_dimension_numbers<[1], [0], [0], [1], [0, 0, 1, 1], [], []>} : vector<5x10xf32>, vector<10x2xf32>, vector<5x2xf32> -> vector<5x2xf32>
    %190 = vector.broadcast %5 : vector<5x1xf32> to vector<5x2xf32>
    %191 = arith.addf %189, %190 : vector<5x2xf32>
    %192 = arith.negf %191 : vector<5x2xf32>
    %193 = math.exp %192 : vector<5x2xf32>
    %cst_71 = arith.constant 1.000000e+00 : f32
    %194 = vector.broadcast %cst_71 : f32 to vector<5x2xf32>
    %195 = arith.addf %194, %193 : vector<5x2xf32>
    %196 = arith.divf %194, %195 : vector<5x2xf32>
    %197 = arith.addf %170, %196 : vector<5x2xf32>
    %c7 = arith.constant 7 : index
    %c0_72 = arith.constant 0 : index
    %c0_73 = arith.constant 0 : index
    %198 = vector.load %arg1[%c7, %c0_72, %c0_73] : memref<8x4x2xf32, #tpu.memory_space<vmem>>, vector<1x4x2xf32>
    %199 = vector.shape_cast %198 : vector<1x4x2xf32> to vector<4x2xf32>
    %cst_74 = arith.constant dense<0.000000e+00> : vector<10x2xf32>
    %200 = tpu.matmul %0, %199, %cst_74 {dimension_numbers = #tpu.dot_dimension_numbers<[1], [0], [0], [1], [0, 0, 1, 1], [], []>} : vector<10x4xf32>, vector<4x2xf32>, vector<10x2xf32> -> vector<10x2xf32>
    %201 = vector.broadcast %1 : vector<10x1xf32> to vector<10x2xf32>
    %202 = arith.addf %200, %201 : vector<10x2xf32>
    %203 = arith.negf %202 : vector<10x2xf32>
    %204 = math.exp %203 : vector<10x2xf32>
    %cst_75 = arith.constant 1.000000e+00 : f32
    %205 = vector.broadcast %cst_75 : f32 to vector<10x2xf32>
    %206 = arith.addf %205, %204 : vector<10x2xf32>
    %207 = arith.divf %205, %206 : vector<10x2xf32>
    %cst_76 = arith.constant dense<0.000000e+00> : vector<10x2xf32>
    %208 = tpu.matmul %2, %207, %cst_76 {dimension_numbers = #tpu.dot_dimension_numbers<[1], [0], [0], [1], [0, 0, 1, 1], [], []>} : vector<10x10xf32>, vector<10x2xf32>, vector<10x2xf32> -> vector<10x2xf32>
    %209 = vector.broadcast %3 : vector<10x1xf32> to vector<10x2xf32>
    %210 = arith.addf %208, %209 : vector<10x2xf32>
    %211 = arith.negf %210 : vector<10x2xf32>
    %212 = math.exp %211 : vector<10x2xf32>
    %cst_77 = arith.constant 1.000000e+00 : f32
    %213 = vector.broadcast %cst_77 : f32 to vector<10x2xf32>
    %214 = arith.addf %213, %212 : vector<10x2xf32>
    %215 = arith.divf %213, %214 : vector<10x2xf32>
    %cst_78 = arith.constant dense<0.000000e+00> : vector<5x2xf32>
    %216 = tpu.matmul %4, %215, %cst_78 {dimension_numbers = #tpu.dot_dimension_numbers<[1], [0], [0], [1], [0, 0, 1, 1], [], []>} : vector<5x10xf32>, vector<10x2xf32>, vector<5x2xf32> -> vector<5x2xf32>
    %217 = vector.broadcast %5 : vector<5x1xf32> to vector<5x2xf32>
    %218 = arith.addf %216, %217 : vector<5x2xf32>
    %219 = arith.negf %218 : vector<5x2xf32>
    %220 = math.exp %219 : vector<5x2xf32>
    %cst_79 = arith.constant 1.000000e+00 : f32
    %221 = vector.broadcast %cst_79 : f32 to vector<5x2xf32>
    %222 = arith.addf %221, %220 : vector<5x2xf32>
    %223 = arith.divf %221, %222 : vector<5x2xf32>
    %224 = arith.addf %197, %223 : vector<5x2xf32>
    %cst_80 = arith.constant 1.250000e-01 : f32
    %225 = vector.broadcast %cst_80 : f32 to vector<5x2xf32>
    %226 = arith.mulf %224, %225 : vector<5x2xf32>
    %cst_81 = arith.constant dense<0.000000e+00> : vector<6x2xf32>
    %227 = tpu.matmul %6, %226, %cst_81 {dimension_numbers = #tpu.dot_dimension_numbers<[1], [0], [0], [1], [0, 0, 1, 1], [], []>} : vector<6x5xf32>, vector<5x2xf32>, vector<6x2xf32> -> vector<6x2xf32>
    %228 = vector.broadcast %7 : vector<6x1xf32> to vector<6x2xf32>
    %229 = arith.addf %227, %228 : vector<6x2xf32>
    %230 = tpu.iota {dimensions = array<i32: 0>} : vector<6x2xi32>
    %c3_i32 = arith.constant 3 : i32
    %231 = vector.broadcast %c3_i32 : i32 to vector<6x2xi32>
    %232 = arith.cmpi slt, %230, %231 : vector<6x2xi32>
    %cst_82 = arith.constant 5.000000e-01 : f32
    %233 = vector.broadcast %cst_82 : f32 to vector<6x2xf32>
    %234 = arith.mulf %233, %229 : vector<6x2xf32>
    %235 = math.exp %234 : vector<6x2xf32>
    %236 = arith.select %232, %229, %235 : vector<6x2xi1>, vector<6x2xf32>
    %c0_83 = arith.constant 0 : index
    %c0_84 = arith.constant 0 : index
    %237 = vector.load %arg10[%c0_83, %c0_84] : memref<6x2xf32, #tpu.memory_space<vmem>>, vector<6x2xf32>
    tpu.vector_store %arg10[%c0_83, %c0_84], %236 {strides = array<i32>} : memref<6x2xf32, #tpu.memory_space<vmem>>, vector<6x2xf32>,
    return
  }
  func.func @transform_0(%arg0: i32) -> (i32, i32, i32) {
    %c0_i32 = arith.constant 0 : i32
    %c0_i32_0 = arith.constant 0 : i32
    %c0_i32_1 = arith.constant 0 : i32
    return %c0_i32, %c0_i32_0, %arg0 : i32, i32, i32
  }
  func.func @transform_1(%arg0: i32) -> (i32, i32) {
    %c0_i32 = arith.constant 0 : i32
    %c0_i32_0 = arith.constant 0 : i32
    %c0_i32_1 = arith.constant 0 : i32
    return %c0_i32, %c0_i32_0 : i32, i32
  }
  func.func @transform_2(%arg0: i32) -> (i32, i32) {
    %c0_i32 = arith.constant 0 : i32
    %c0_i32_0 = arith.constant 0 : i32
    %c0_i32_1 = arith.constant 0 : i32
    return %c0_i32, %c0_i32_0 : i32, i32
  }
  func.func @transform_3(%arg0: i32) -> (i32, i32) {
    %c0_i32 = arith.constant 0 : i32
    %c0_i32_0 = arith.constant 0 : i32
    %c0_i32_1 = arith.constant 0 : i32
    return %c0_i32, %c0_i32_0 : i32, i32
  }
  func.func @transform_4(%arg0: i32) -> (i32, i32) {
    %c0_i32 = arith.constant 0 : i32
    %c0_i32_0 = arith.constant 0 : i32
    %c0_i32_1 = arith.constant 0 : i32
    return %c0_i32, %c0_i32_0 : i32, i32
  }
  func.func @transform_5(%arg0: i32) -> (i32, i32) {
    %c0_i32 = arith.constant 0 : i32
    %c0_i32_0 = arith.constant 0 : i32
    %c0_i32_1 = arith.constant 0 : i32
    return %c0_i32, %c0_i32_0 : i32, i32
  }
  func.func @transform_6(%arg0: i32) -> (i32, i32) {
    %c0_i32 = arith.constant 0 : i32
    %c0_i32_0 = arith.constant 0 : i32
    %c0_i32_1 = arith.constant 0 : i32
    return %c0_i32, %c0_i32_0 : i32, i32
  }
  func.func @transform_7(%arg0: i32) -> (i32, i32) {
    %c0_i32 = arith.constant 0 : i32
    %c0_i32_0 = arith.constant 0 : i32
    %c0_i32_1 = arith.constant 0 : i32
    return %c0_i32, %c0_i32_0 : i32, i32
  }
  func.func @transform_8(%arg0: i32) -> (i32, i32) {
    %c0_i32 = arith.constant 0 : i32
    %c0_i32_0 = arith.constant 0 : i32
    %c0_i32_1 = arith.constant 0 : i32
    return %c0_i32, %c0_i32_0 : i32, i32
  }
  func.func @transform_9(%arg0: i32) -> (i32, i32) {
    %c0_i32 = arith.constant 0 : i32
    %c0_i32_0 = arith.constant 0 : i32
    return %c0_i32, %arg0 : i32, i32
  }
}

</mosaic_0001>

<bundles_post_ra>
// kernel: tpu_custom_call.1
= control target key start
LH: loop header
LB: loop body
LE: loop exit
PB: predicated region body
PF: predicated region fallthrough
CT: control target
= control target key end

     0   :  { %vm62_vm0 = vcmask 1043456   ;;  %vm55_vm1 = vcmask 31744   ;;  %v2881_v3 = vmov 0   ;;  %vm163_vm2 = vcmask 80896   ;;  %s3234_s0 = inlined_call_operand.vmem [shape: f32[8,4,2], index: 0, kind: input, shape index: {}]   ;;  %s3235_s1 = inlined_call_operand.vmem [shape: f32[10,4], index: 1, kind: input, shape index: {}]   ;;  %s3236_s2 = inlined_call_operand.vmem [shape: f32[10,1], index: 2, kind: input, shape index: {}]   ;;  %s3237_s6 = inlined_call_operand.vmem [shape: f32[5,1], index: 6, kind: input, shape index: {}]   ;;  %s3238_s3 = inlined_call_operand.vmem [shape: f32[10,10], index: 3, kind: input, shape index: {}]   ;;  %s3239_s4 = inlined_call_operand.vmem [shape: f32[10,1], index: 4, kind: input, shape index: {}]   ;;  %s3240_s8 = inlined_call_operand.vmem [shape: f32[6,1], index: 8, kind: input, shape index: {}]   ;;  %s3241_s5 = inlined_call_operand.vmem [shape: f32[5,10], index: 5, kind: input, shape index: {}]   ;;  %s3242_s7 = inlined_call_operand.vmem [shape: f32[6,5], index: 7, kind: input, shape index: {}]   ;;  %s3243_s9 = inlined_call_operand.vmem [shape: f32[6,2], index: 9, kind: output, shape index: {}]  }
   0x1   :  { %v44_v0 = vld [vmem:[%s3234_s0] sm:$0xf]  ;;  %v2947_v2 = vld [vmem:[%s3235_s1 + $0x8] sm:$0x3]  ;;  %2717 = vset.pattern.permute.xlu0 %v2881_v3  ;;  %2718 = vset.pattern.permute.xlu1 %v2881_v3  ;;  %vm170_vm3 = vcmask 1041408   ;;  %vm2882_vm4 = vmmov 1  }
   0x2   :  { %v2942_v1 = vld [vmem:[%s3235_s1] sm:$0xff]  ;;  %2475 = vmatprep.subr.msk.mxu0 %vm62_vm0, %v44_v0  ;;  %v35_v5 = vld [vmem:[%s3236_s2 + $0x8] sm:$0x3]  ;;  %vm2986_vm5 = vmpackc.low %vm170_vm3, %vm2882_vm4  ;;  %v2883_v29 = vmov 0.0|0.0   ;;  %vm2884_vm6 = vmmov 0   ;;  %v2885_v30 = vmov 0.0  }
   0x3   :  { %2477 = vmatprep.mubr.msk.f32.mxu0 %vm55_vm1, %v2942_v1  ;;  %v34_v4 = vld [vmem:[%s3236_s2] sm:$0xff]  ;;  %2476 = vmatpush3.msk.msra.mxu0 %vm62_vm0, %v44_v0  ;;  %v39_v9 = vld [vmem:[%s3239_s4 + $0x8] sm:$0x3]  ;;  %vm2193_vm7 = vcmask 1044480   ;;  %vm2189_vm8 = vcmask 39936   ;;  %vm2274_vm10 = vcmask 13312  }
   0x4   :  { %47 = vperm.xlu0 %2717, %v34_v4   ;;  %2478 = vmatmul.mubr.msk.f32.vlgmr.msra.gmra.mrb[0].mxu0 %vm55_vm1, %v2947_v2  ;;  %v41_v6 = vld [vmem:[%s3237_s6] sm:$0x1f]  ;;  %v3000_v28 = vld [vmem:[%s3238_s3 + $0x8] sm:$0x3] }
   0x5   :  { %v2967_v7 = vld [vmem:[%s3238_s3] sm:$0xff]  ;;  %2638 = vmatprep.subr.bf16.mxu0 %v2883_v29  ;;  %2491 = vmatprep.mubr.msk.f32.mxu0 %vm2884_vm6, %v2885_v30  ;;  %v2307_v60 = vld [vmem:[%s3234_s0 + $0x8] sm:$0xf] }
   0x6   :  { %2484 = vmatprep.mubr.msk.f32.mxu1 %vm163_vm2, %v2967_v7  ;;  %v38_v8 = vld [vmem:[%s3239_s4] sm:$0xff] }
   0x7   :  { %155 = vperm.xlu1 %2718, %v38_v8   ;;  %v43_v10 = vld [vmem:[%s3240_s8] sm:$0x3f] }
   0x8   :  { %52 = vperm.xlu0 %2717, %v35_v5   ;;  %v2293_v27 = vld [vmem:[%s3234_s0 + $0x4] sm:$0xf] }
   0x9   :  { %v3029_v57 = vld [vmem:[%s3241_s5] sm:$0x1f] }
   0xa   :  { %v42_v25 = vld [vmem:[%s3242_s7] sm:$0x3f] }
   0xb   :  { %160 = vperm.xlu1 %2718, %v39_v9  }
   0xc   :  { %263 = vperm.xlu0 %2717, %v41_v6  }
   0xf   :  { %2186 = vperm.xlu1 %2718, %v43_v10  }
  0x83   :  { %v2980_v11 = vpop.permute.xlu0 %47 }
  0x86   :  { %v3016_v31 = vpop.permute.xlu1 %155 }
  0x87   :  { %v2982_v12 = vpop.permute.xlu0 %52 }
  0x8a   :  { %v3018_v32 = vpop.permute.xlu1 %160 }
  0xd7   :  { %v2479_v13 = vpop.f32.mrb[0].mxu0 }
  0xd8   :  { %v138_v14 = vadd.f32 %v2479_v13, %v2982_v12  ;;  %v132_v15 = vpop.f32.mrb[1].mxu0 }
  0xd9   :  { %v133_v16 = vadd.f32 %v132_v15, %v2980_v11 }
  0xda   :  { %v2284_v17 = vmul.f32 -1.442695, %v138_v14 }
  0xdb   :  { %v2283_v18 = vmul.f32 -1.442695, %v133_v16 }
  0xdc   :  { %2719 = vpow2.f32 %v2284_v17 }
  0xdd   :  { %2721 = vpow2.f32 %v2283_v18 }
  0xe6   :  { %v2720_v19 = vpop.eup %2719 }
  0xe7   :  { %v2722_v20 = vpop.eup %2721  ;;  %v148_v21 = vadd.f32 1.0, %v2720_v19 }
  0xe8   :  { %v147_v22 = vadd.f32 1.0, %v2722_v20 }
  0xe9   :  { %2723 = vrcp.f32 %v148_v21 }
  0xea   :  { %2725 = vrcp.f32 %v147_v22 }
  0xf3   :  { %v2724_v23 = vpop.eup %2723 }
  0xf4   :  { %v2726_v24 = vpop.eup %2725 }
  0xf5   :  { %v2632_v26 = vpack.c.bf16 %v2724_v23, %v2726_v24 }
  0xf7   :  { %2634 = vmatprep.subr.msk.bf16.mxu1 %vm2986_vm5, %v2632_v26 }
  0xf8   :  { %2637 = vmatpush3.bf16.msk.msra.mxu1 %vm2986_vm5, %v2632_v26 }
  0xf9   :  { %2494 = vmatprep.subr.msk.mxu1 %vm62_vm0, %v2293_v27 }
  0xfb   :  { %2485 = vmatmul.mubr.msk.f32.vlgmr.msra.gmra.mrb[0].mxu1 %vm163_vm2, %v3000_v28 }
  0xfc   :  { %2495 = vmatpush3.msk.msra.mxu1 %vm62_vm0, %v2293_v27  ;;  %2496 = vmatprep.mubr.msk.f32.mxu1 %vm55_vm1, %v2942_v1 }
  0xfd   :  { %2648 = vmatprep.subr.bf16.mxu1 %v2883_v29 }
  0xff   :  { %2497 = vmatmul.mubr.msk.f32.vlgmr.msra.gmra.mrb[2].mxu1 %vm55_vm1, %v2947_v2 }
 0x100   :  { %2510 = vmatprep.mubr.msk.f32.mxu1 %vm2884_vm6, %v2885_v30 }
 0x1ce   :  { %v2486_v33 = vpop.f32.mrb[0].mxu1 }
 0x1cf   :  { %v246_v34 = vadd.f32 %v2486_v33, %v3018_v32  ;;  %v240_v35 = vpop.f32.mrb[1].mxu1 }
 0x1d0   :  { %v241_v36 = vadd.f32 %v240_v35, %v3016_v31 }
 0x1d1   :  { %v2289_v37 = vmul.f32 -1.442695, %v246_v34 }
 0x1d2   :  { %v2288_v38 = vmul.f32 -1.442695, %v241_v36  ;;  %v2498_v39 = vpop.f32.mrb[2].mxu1  ;;  %v2321_v36 = vld [vmem:[%s3234_s0 + $0xc] sm:$0xf] }
 0x1d3   :  { %2727 = vpow2.f32 %v2289_v37  ;;  %v426_v40 = vadd.f32 %v2498_v39, %v2982_v12  ;;  %v420_v41 = vpop.f32.mrb[3].mxu1  ;;  %v3081_v37 = vpop.permute.xlu0 %263 }
 0x1d4   :  { %2729 = vpow2.f32 %v2288_v38  ;;  %v421_v42 = vadd.f32 %v420_v41, %v2980_v11 }
 0x1d5   :  { %v2298_v43 = vmul.f32 -1.442695, %v426_v40 }
 0x1d6   :  { %v2297_v44 = vmul.f32 -1.442695, %v421_v42 }
 0x1d7   :  { %2731 = vpow2.f32 %v2298_v43 }
 0x1d8   :  { %2733 = vpow2.f32 %v2297_v44 }
 0x1dd   :  { %v2728_v45 = vpop.eup %2727 }
 0x1de   :  { %v2730_v46 = vpop.eup %2729  ;;  %v256_v47 = vadd.f32 1.0, %v2728_v45 }
 0x1df   :  { %v255_v48 = vadd.f32 1.0, %v2730_v46 }
 0x1e0   :  { %2735 = vrcp.f32 %v256_v47 }
 0x1e1   :  { %v2732_v49 = vpop.eup %2731  ;;  %2737 = vrcp.f32 %v255_v48 }
 0x1e2   :  { %v2734_v50 = vpop.eup %2733  ;;  %v436_v51 = vadd.f32 1.0, %v2732_v49 }
 0x1e3   :  { %v435_v52 = vadd.f32 1.0, %v2734_v50 }
 0x1e4   :  { %2739 = vrcp.f32 %v436_v51 }
 0x1e5   :  { %2741 = vrcp.f32 %v435_v52 }
 0x1ea   :  { %v2736_v53 = vpop.eup %2735 }
 0x1eb   :  { %v2738_v54 = vpop.eup %2737 }
 0x1ec   :  { %v2639_v55 = vpack.c.bf16 %v2736_v53, %v2738_v54 }
 0x1ee   :  { %v2740_v56 = vpop.eup %2739  ;;  %2641 = vmatpush3.bf16.msk.msra.mxu0 %vm2986_vm5, %v2639_v55 }
 0x1ef   :  { %v2742_v58 = vpop.eup %2741 }
 0x1f0   :  { %v2642_v59 = vpack.c.bf16 %v2740_v56, %v2742_v58 }
 0x1f1   :  { %2492 = vmatmul.mubr.msk.f32.vlgmr.msra.gmra.mrb[2].mxu0 %vm163_vm2, %v3029_v57 }
 0x1f2   :  { %2644 = vmatprep.subr.msk.bf16.mxu0 %vm2986_vm5, %v2642_v59  ;;  %2503 = vmatprep.mubr.msk.f32.mxu0 %vm163_vm2, %v2967_v7 }
 0x1f3   :  { %2647 = vmatpush3.bf16.msk.msra.mxu0 %vm2986_vm5, %v2642_v59 }
 0x1f4   :  { %2513 = vmatprep.subr.msk.mxu0 %vm62_vm0, %v2307_v60 }
 0x1f6   :  { %2504 = vmatmul.mubr.msk.f32.vlgmr.msra.gmra.mrb[4].mxu0 %vm163_vm2, %v3000_v28 }
 0x1f7   :  { %2514 = vmatpush3.msk.msra.mxu0 %vm62_vm0, %v2307_v60  ;;  %2515 = vmatprep.mubr.msk.f32.mxu0 %vm55_vm1, %v2942_v1 }
 0x1f8   :  { %2658 = vmatprep.subr.bf16.mxu0 %v2883_v29 }
 0x1fa   :  { %2516 = vmatmul.mubr.msk.f32.vlgmr.msra.gmra.mrb[6].mxu0 %vm55_vm1, %v2947_v2 }
 0x1fb   :  { %2529 = vmatprep.mubr.msk.f32.mxu0 %vm2884_vm6, %v2885_v30 }
 0x2c4   :  { %v338_v61 = vpop.f32.mrb[2].mxu0 }
 0x2c5   :  { %v2493_v62 = vpop.f32.mrb[3].mxu0  ;;  %v339_v38 = vadd.f32 %v338_v61, %v3081_v37 }
 0x2c7   :  { %v2292_v39 = vmul.f32 -1.442695, %v339_v38 }
 0x2c9   :  { %v2505_v63 = vpop.f32.mrb[4].mxu0 }
 0x2ca   :  { %v516_v0 = vadd.f32 %v2505_v63, %v3018_v32  ;;  %v510_v3 = vpop.f32.mrb[5].mxu0 }
 0x2cb   :  { %v511_v4 = vadd.f32 %v510_v3, %v3016_v31 }
 0x2cc   :  { %v2303_v5 = vmul.f32 -1.442695, %v516_v0 }
 0x2cd   :  { %v2302_v6 = vmul.f32 -1.442695, %v511_v4  ;;  %v2517_v8 = vpop.f32.mrb[6].mxu0 }
 0x2ce   :  { %2743 = vpow2.f32 %v2303_v5  ;;  %v688_v9 = vadd.f32 %v2517_v8, %v2982_v12  ;;  %v682_v10 = vpop.f32.mrb[7].mxu0 }
 0x2cf   :  { %2745 = vpow2.f32 %v2302_v6  ;;  %v683_v13 = vadd.f32 %v682_v10, %v2980_v11 }
 0x2d0   :  { %v2312_v14 = vmul.f32 -1.442695, %v688_v9 }
 0x2d1   :  { %v2311_v15 = vmul.f32 -1.442695, %v683_v13 }
 0x2d2   :  { %2747 = vpow2.f32 %v2312_v14 }
 0x2d3   :  { %2749 = vpow2.f32 %v2311_v15 }
 0x2d8   :  { %v2744_v16 = vpop.eup %2743 }
 0x2d9   :  { %v2746_v17 = vpop.eup %2745  ;;  %v526_v18 = vadd.f32 1.0, %v2744_v16 }
 0x2da   :  { %v525_v19 = vadd.f32 1.0, %v2746_v17 }
 0x2db   :  { %2751 = vrcp.f32 %v526_v18 }
 0x2dc   :  { %v2748_v20 = vpop.eup %2747  ;;  %2753 = vrcp.f32 %v525_v19  ;;  %v2335_v19 = vld [vmem:[%s3234_s0 + $0x10] sm:$0xf] }
 0x2dd   :  { %v2750_v21 = vpop.eup %2749  ;;  %v698_v22 = vadd.f32 1.0, %v2748_v20 }
 0x2de   :  { %v697_v23 = vadd.f32 1.0, %v2750_v21 }
 0x2df   :  { %2755 = vrcp.f32 %v698_v22 }
 0x2e0   :  { %2757 = vrcp.f32 %v697_v23 }
 0x2e1   :  { %2759 = vpow2.f32 %v2292_v39 }
 0x2e5   :  { %v2752_v24 = vpop.eup %2751 }
 0x2e6   :  { %v2754_v26 = vpop.eup %2753 }
 0x2e7   :  { %v2649_v27 = vpack.c.bf16 %v2752_v24, %v2754_v26 }
 0x2e9   :  { %v2756_v33 = vpop.eup %2755  ;;  %2651 = vmatpush3.bf16.msk.msra.mxu1 %vm2986_vm5, %v2649_v27 }
 0x2ea   :  { %v2758_v34 = vpop.eup %2757 }
 0x2eb   :  { %v2652_v35 = vpack.c.bf16 %v2756_v33, %v2758_v34  ;;  %v2760_v51 = vpop.eup %2759 }
 0x2ec   :  { %2511 = vmatmul.mubr.msk.f32.vlgmr.msra.gmra.mrb[4].mxu1 %vm163_vm2, %v3029_v57  ;;  %v345_v56 = vadd.f32 1.0, %v2760_v51 }
 0x2ed   :  { %2654 = vmatprep.subr.msk.bf16.mxu1 %vm2986_vm5, %v2652_v35  ;;  %2522 = vmatprep.mubr.msk.f32.mxu1 %vm163_vm2, %v2967_v7 }
 0x2ee   :  { %2657 = vmatpush3.bf16.msk.msra.mxu1 %vm2986_vm5, %v2652_v35 }
 0x2ef   :  { %2532 = vmatprep.subr.msk.mxu1 %vm62_vm0, %v2321_v36 }
 0x2f1   :  { %2523 = vmatmul.mubr.msk.f32.vlgmr.msra.gmra.mrb[6].mxu1 %vm163_vm2, %v3000_v28 }
 0x2f2   :  { %2533 = vmatpush3.msk.msra.mxu1 %vm62_vm0, %v2321_v36  ;;  %2534 = vmatprep.mubr.msk.f32.mxu1 %vm55_vm1, %v2942_v1 }
 0x2f3   :  { %2668 = vmatprep.subr.bf16.mxu1 %v2883_v29 }
 0x2f5   :  { %2535 = vmatmul.mubr.msk.f32.vlgmr.msra.gmra.mrb[8].mxu1 %vm55_vm1, %v2947_v2 }
 0x2f6   :  { %2548 = vmatprep.mubr.msk.f32.mxu1 %vm2884_vm6, %v2885_v30 }
 0x3bf   :  { %v600_v40 = vpop.f32.mrb[4].mxu1 }
 0x3c0   :  { %v601_v41 = vadd.f32 %v600_v40, %v3081_v37  ;;  %v2512_v42 = vpop.f32.mrb[5].mxu1 }
 0x3c2   :  { %v2306_v43 = vmul.f32 -1.442695, %v601_v41 }
 0x3c4   :  { %2761 = vpow2.f32 %v2306_v43  ;;  %v2524_v44 = vpop.f32.mrb[6].mxu1 }
 0x3c5   :  { %v778_v45 = vadd.f32 %v2524_v44, %v3018_v32  ;;  %v772_v46 = vpop.f32.mrb[7].mxu1 }
 0x3c6   :  { %v773_v47 = vadd.f32 %v772_v46, %v3016_v31 }
 0x3c7   :  { %v2317_v48 = vmul.f32 -1.442695, %v778_v45 }
 0x3c8   :  { %v2316_v49 = vmul.f32 -1.442695, %v773_v47  ;;  %v2536_v50 = vpop.f32.mrb[8].mxu1 }
 0x3c9   :  { %2763 = vpow2.f32 %v2317_v48  ;;  %v950_v52 = vadd.f32 %v2536_v50, %v2982_v12  ;;  %v944_v53 = vpop.f32.mrb[9].mxu1 }
 0x3ca   :  { %2765 = vpow2.f32 %v2316_v49  ;;  %v945_v54 = vadd.f32 %v944_v53, %v2980_v11 }
 0x3cb   :  { %v2326_v55 = vmul.f32 -1.442695, %v950_v52 }
 0x3cc   :  { %v2325_v58 = vmul.f32 -1.442695, %v945_v54 }
 0x3cd   :  { %2767 = vpow2.f32 %v2326_v55 }
 0x3ce   :  { %v2762_v59 = vpop.eup %2761  ;;  %2769 = vpow2.f32 %v2325_v58 }
 0x3cf   :  { %v607_v60 = vadd.f32 1.0, %v2762_v59  ;;  %2771 = vrcp.f32 %v345_v56 }
 0x3d1   :  { %2773 = vrcp.f32 %v607_v60 }
 0x3d3   :  { %v2764_v61 = vpop.eup %2763 }
 0x3d4   :  { %v2766_v62 = vpop.eup %2765  ;;  %v788_v63 = vadd.f32 1.0, %v2764_v61 }
 0x3d5   :  { %v787_v0 = vadd.f32 1.0, %v2766_v62  ;;  %v2349_v62 = vld [vmem:[%s3234_s0 + $0x14] sm:$0xf] }
 0x3d6   :  { %2775 = vrcp.f32 %v788_v63 }
 0x3d7   :  { %v2768_v3 = vpop.eup %2767  ;;  %2777 = vrcp.f32 %v787_v0 }
 0x3d8   :  { %v2770_v4 = vpop.eup %2769  ;;  %v960_v5 = vadd.f32 1.0, %v2768_v3 }
 0x3d9   :  { %v959_v6 = vadd.f32 1.0, %v2770_v4  ;;  %v2772_v8 = vpop.eup %2771 }
 0x3da   :  { %2779 = vrcp.f32 %v960_v5 }
 0x3db   :  { %v2774_v9 = vpop.eup %2773  ;;  %2781 = vrcp.f32 %v959_v6 }
 0x3dc   :  { %v610_v10 = vadd.f32 %v2774_v9, %v2772_v8 }
 0x3e0   :  { %v2776_v13 = vpop.eup %2775 }
 0x3e1   :  { %v2778_v14 = vpop.eup %2777 }
 0x3e2   :  { %v2659_v15 = vpack.c.bf16 %v2776_v13, %v2778_v14 }
 0x3e4   :  { %v2780_v16 = vpop.eup %2779  ;;  %2661 = vmatpush3.bf16.msk.msra.mxu0 %vm2986_vm5, %v2659_v15 }
 0x3e5   :  { %v2782_v17 = vpop.eup %2781 }
 0x3e6   :  { %v2662_v18 = vpack.c.bf16 %v2780_v16, %v2782_v17 }
 0x3e7   :  { %2530 = vmatmul.mubr.msk.f32.vlgmr.msra.gmra.mrb[8].mxu0 %vm163_vm2, %v3029_v57 }
 0x3e8   :  { %2664 = vmatprep.subr.msk.bf16.mxu0 %vm2986_vm5, %v2662_v18  ;;  %2541 = vmatprep.mubr.msk.f32.mxu0 %vm163_vm2, %v2967_v7 }
 0x3e9   :  { %2667 = vmatpush3.bf16.msk.msra.mxu0 %vm2986_vm5, %v2662_v18 }
 0x3ea   :  { %2551 = vmatprep.subr.msk.mxu0 %vm62_vm0, %v2335_v19 }
 0x3ec   :  { %2542 = vmatmul.mubr.msk.f32.vlgmr.msra.gmra.mrb[10].mxu0 %vm163_vm2, %v3000_v28 }
 0x3ed   :  { %2552 = vmatpush3.msk.msra.mxu0 %vm62_vm0, %v2335_v19  ;;  %2553 = vmatprep.mubr.msk.f32.mxu0 %vm55_vm1, %v2942_v1 }
 0x3ee   :  { %2678 = vmatprep.subr.bf16.mxu0 %v2883_v29 }
 0x3f0   :  { %2554 = vmatmul.mubr.msk.f32.vlgmr.msra.gmra.mrb[12].mxu0 %vm55_vm1, %v2947_v2 }
 0x3f1   :  { %2567 = vmatprep.mubr.msk.f32.mxu0 %vm2884_vm6, %v2885_v30 }
 0x4ba   :  { %v862_v20 = vpop.f32.mrb[8].mxu0 }
 0x4bb   :  { %v863_v21 = vadd.f32 %v862_v20, %v3081_v37  ;;  %v2531_v22 = vpop.f32.mrb[9].mxu0 }
 0x4bd   :  { %v2320_v23 = vmul.f32 -1.442695, %v863_v21 }
 0x4bf   :  { %2783 = vpow2.f32 %v2320_v23  ;;  %v2543_v24 = vpop.f32.mrb[10].mxu0 }
 0x4c0   :  { %v1040_v26 = vadd.f32 %v2543_v24, %v3018_v32  ;;  %v1034_v27 = vpop.f32.mrb[11].mxu0 }
 0x4c1   :  { %v1035_v33 = vadd.f32 %v1034_v27, %v3016_v31 }
 0x4c2   :  { %v2331_v34 = vmul.f32 -1.442695, %v1040_v26 }
 0x4c3   :  { %v2330_v35 = vmul.f32 -1.442695, %v1035_v33  ;;  %v2555_v36 = vpop.f32.mrb[12].mxu0 }
 0x4c4   :  { %2785 = vpow2.f32 %v2331_v34  ;;  %v1212_v38 = vadd.f32 %v2555_v36, %v2982_v12  ;;  %v1206_v39 = vpop.f32.mrb[13].mxu0 }
 0x4c5   :  { %2787 = vpow2.f32 %v2330_v35  ;;  %v1207_v40 = vadd.f32 %v1206_v39, %v2980_v11 }
 0x4c6   :  { %v2340_v41 = vmul.f32 -1.442695, %v1212_v38 }
 0x4c7   :  { %v2339_v42 = vmul.f32 -1.442695, %v1207_v40 }
 0x4c8   :  { %2789 = vpow2.f32 %v2340_v41 }
 0x4c9   :  { %v2784_v43 = vpop.eup %2783  ;;  %2791 = vpow2.f32 %v2339_v42 }
 0x4ca   :  { %v869_v44 = vadd.f32 1.0, %v2784_v43 }
 0x4cc   :  { %2793 = vrcp.f32 %v869_v44 }
 0x4ce   :  { %v2786_v45 = vpop.eup %2785 }
 0x4cf   :  { %v2788_v46 = vpop.eup %2787  ;;  %v1050_v47 = vadd.f32 1.0, %v2786_v45  ;;  %v2363_v45 = vld [vmem:[%s3234_s0 + $0x18] sm:$0xf] }
 0x4d0   :  { %v1049_v48 = vadd.f32 1.0, %v2788_v46 }
 0x4d1   :  { %2795 = vrcp.f32 %v1050_v47 }
 0x4d2   :  { %v2790_v49 = vpop.eup %2789  ;;  %2797 = vrcp.f32 %v1049_v48 }
 0x4d3   :  { %v2792_v50 = vpop.eup %2791  ;;  %v1222_v51 = vadd.f32 1.0, %v2790_v49 }
 0x4d4   :  { %v1221_v52 = vadd.f32 1.0, %v2792_v50 }
 0x4d5   :  { %2799 = vrcp.f32 %v1222_v51 }
 0x4d6   :  { %v2794_v53 = vpop.eup %2793  ;;  %2801 = vrcp.f32 %v1221_v52 }
 0x4d7   :  { %v872_v54 = vadd.f32 %v2794_v53, %v610_v10 }
 0x4db   :  { %v2796_v55 = vpop.eup %2795 }
 0x4dc   :  { %v2798_v56 = vpop.eup %2797 }
 0x4dd   :  { %v2669_v58 = vpack.c.bf16 %v2796_v55, %v2798_v56 }
 0x4df   :  { %v2800_v59 = vpop.eup %2799  ;;  %2671 = vmatpush3.bf16.msk.msra.mxu1 %vm2986_vm5, %v2669_v58 }
 0x4e0   :  { %v2802_v60 = vpop.eup %2801 }
 0x4e1   :  { %v2672_v61 = vpack.c.bf16 %v2800_v59, %v2802_v60 }
 0x4e2   :  { %2549 = vmatmul.mubr.msk.f32.vlgmr.msra.gmra.mrb[10].mxu1 %vm163_vm2, %v3029_v57 }
 0x4e3   :  { %2674 = vmatprep.subr.msk.bf16.mxu1 %vm2986_vm5, %v2672_v61  ;;  %2560 = vmatprep.mubr.msk.f32.mxu1 %vm163_vm2, %v2967_v7 }
 0x4e4   :  { %2677 = vmatpush3.bf16.msk.msra.mxu1 %vm2986_vm5, %v2672_v61 }
 0x4e5   :  { %2570 = vmatprep.subr.msk.mxu1 %vm62_vm0, %v2349_v62 }
 0x4e7   :  { %2561 = vmatmul.mubr.msk.f32.vlgmr.msra.gmra.mrb[12].mxu1 %vm163_vm2, %v3000_v28 }
 0x4e8   :  { %2571 = vmatpush3.msk.msra.mxu1 %vm62_vm0, %v2349_v62  ;;  %2572 = vmatprep.mubr.msk.f32.mxu1 %vm55_vm1, %v2942_v1 }
 0x4e9   :  { %2688 = vmatprep.subr.bf16.mxu1 %v2883_v29 }
 0x4eb   :  { %2573 = vmatmul.mubr.msk.f32.vlgmr.msra.gmra.mrb[14].mxu1 %vm55_vm1, %v2947_v2 }
 0x4ec   :  { %2586 = vmatprep.mubr.msk.f32.mxu1 %vm2884_vm6, %v2885_v30 }
 0x5b5   :  { %v1124_v63 = vpop.f32.mrb[10].mxu1 }
 0x5b6   :  { %v1125_v0 = vadd.f32 %v1124_v63, %v3081_v37  ;;  %v2550_v3 = vpop.f32.mrb[11].mxu1 }
 0x5b8   :  { %v2334_v4 = vmul.f32 -1.442695, %v1125_v0 }
 0x5ba   :  { %2803 = vpow2.f32 %v2334_v4  ;;  %v2562_v5 = vpop.f32.mrb[12].mxu1 }
 0x5bb   :  { %v1302_v6 = vadd.f32 %v2562_v5, %v3018_v32  ;;  %v1296_v8 = vpop.f32.mrb[13].mxu1 }
 0x5bc   :  { %v1297_v9 = vadd.f32 %v1296_v8, %v3016_v31 }
 0x5bd   :  { %v2345_v10 = vmul.f32 -1.442695, %v1302_v6 }
 0x5be   :  { %v2344_v13 = vmul.f32 -1.442695, %v1297_v9  ;;  %v2574_v14 = vpop.f32.mrb[14].mxu1 }
 0x5bf   :  { %2805 = vpow2.f32 %v2345_v10  ;;  %v1474_v15 = vadd.f32 %v2574_v14, %v2982_v12  ;;  %v1468_v16 = vpop.f32.mrb[15].mxu1 }
 0x5c0   :  { %2807 = vpow2.f32 %v2344_v13  ;;  %v1469_v17 = vadd.f32 %v1468_v16, %v2980_v11 }
 0x5c1   :  { %v2354_v18 = vmul.f32 -1.442695, %v1474_v15 }
 0x5c2   :  { %v2353_v19 = vmul.f32 -1.442695, %v1469_v17 }
 0x5c3   :  { %2809 = vpow2.f32 %v2354_v18 }
 0x5c4   :  { %v2804_v20 = vpop.eup %2803  ;;  %2811 = vpow2.f32 %v2353_v19 }
 0x5c5   :  { %v1131_v21 = vadd.f32 1.0, %v2804_v20 }
 0x5c7   :  { %2813 = vrcp.f32 %v1131_v21 }
 0x5c9   :  { %v2806_v22 = vpop.eup %2805 }
 0x5ca   :  { %v2808_v23 = vpop.eup %2807  ;;  %v1312_v24 = vadd.f32 1.0, %v2806_v22  ;;  %v2377_v22 = vld [vmem:[%s3234_s0 + $0x1c] sm:$0xf] }
 0x5cb   :  { %v1311_v26 = vadd.f32 1.0, %v2808_v23 }
 0x5cc   :  { %2815 = vrcp.f32 %v1312_v24 }
 0x5cd   :  { %v2810_v27 = vpop.eup %2809  ;;  %2817 = vrcp.f32 %v1311_v26 }
 0x5ce   :  { %v2812_v33 = vpop.eup %2811  ;;  %v1484_v34 = vadd.f32 1.0, %v2810_v27 }
 0x5cf   :  { %v1483_v35 = vadd.f32 1.0, %v2812_v33 }
 0x5d0   :  { %2819 = vrcp.f32 %v1484_v34 }
 0x5d1   :  { %v2814_v36 = vpop.eup %2813  ;;  %2821 = vrcp.f32 %v1483_v35 }
 0x5d2   :  { %v1134_v38 = vadd.f32 %v2814_v36, %v872_v54 }
 0x5d6   :  { %v2816_v39 = vpop.eup %2815 }
 0x5d7   :  { %v2818_v40 = vpop.eup %2817 }
 0x5d8   :  { %v2679_v41 = vpack.c.bf16 %v2816_v39, %v2818_v40 }
 0x5da   :  { %v2820_v42 = vpop.eup %2819  ;;  %2681 = vmatpush3.bf16.msk.msra.mxu0 %vm2986_vm5, %v2679_v41 }
 0x5db   :  { %v2822_v43 = vpop.eup %2821 }
 0x5dc   :  { %v2682_v44 = vpack.c.bf16 %v2820_v42, %v2822_v43 }
 0x5dd   :  { %2568 = vmatmul.mubr.msk.f32.vlgmr.msra.gmra.mrb[14].mxu0 %vm163_vm2, %v3029_v57 }
 0x5de   :  { %2684 = vmatprep.subr.msk.bf16.mxu0 %vm2986_vm5, %v2682_v44  ;;  %2579 = vmatprep.mubr.msk.f32.mxu0 %vm163_vm2, %v2967_v7 }
 0x5df   :  { %2687 = vmatpush3.bf16.msk.msra.mxu0 %vm2986_vm5, %v2682_v44 }
 0x5e0   :  { %2589 = vmatprep.subr.msk.mxu0 %vm62_vm0, %v2363_v45 }
 0x5e2   :  { %2580 = vmatmul.mubr.msk.f32.vlgmr.msra.gmra.mrb[16].mxu0 %vm163_vm2, %v3000_v28 }
 0x5e3   :  { %2590 = vmatpush3.msk.msra.mxu0 %vm62_vm0, %v2363_v45  ;;  %2591 = vmatprep.mubr.msk.f32.mxu0 %vm55_vm1, %v2942_v1 }
 0x5e4   :  { %2698 = vmatprep.subr.bf16.mxu0 %v2883_v29 }
 0x5e6   :  { %2592 = vmatmul.mubr.msk.f32.vlgmr.msra.gmra.mrb[18].mxu0 %vm55_vm1, %v2947_v2 }
 0x5e7   :  { %2605 = vmatprep.mubr.msk.f32.mxu0 %vm2884_vm6, %v2885_v30 }
 0x6b0   :  { %v1386_v46 = vpop.f32.mrb[14].mxu0 }
 0x6b1   :  { %v1387_v47 = vadd.f32 %v1386_v46, %v3081_v37  ;;  %v2569_v48 = vpop.f32.mrb[15].mxu0 }
 0x6b3   :  { %v2348_v49 = vmul.f32 -1.442695, %v1387_v47 }
 0x6b5   :  { %2823 = vpow2.f32 %v2348_v49  ;;  %v2581_v50 = vpop.f32.mrb[16].mxu0 }
 0x6b6   :  { %v1564_v51 = vadd.f32 %v2581_v50, %v3018_v32  ;;  %v1558_v52 = vpop.f32.mrb[17].mxu0 }
 0x6b7   :  { %v1559_v53 = vadd.f32 %v1558_v52, %v3016_v31 }
 0x6b8   :  { %v2359_v54 = vmul.f32 -1.442695, %v1564_v51 }
 0x6b9   :  { %v2358_v55 = vmul.f32 -1.442695, %v1559_v53  ;;  %v2593_v56 = vpop.f32.mrb[18].mxu0 }
 0x6ba   :  { %2825 = vpow2.f32 %v2359_v54  ;;  %v1736_v58 = vadd.f32 %v2593_v56, %v2982_v12  ;;  %v1730_v59 = vpop.f32.mrb[19].mxu0 }
 0x6bb   :  { %2827 = vpow2.f32 %v2358_v55  ;;  %v1731_v60 = vadd.f32 %v1730_v59, %v2980_v11 }
 0x6bc   :  { %v2368_v61 = vmul.f32 -1.442695, %v1736_v58 }
 0x6bd   :  { %v2367_v62 = vmul.f32 -1.442695, %v1731_v60 }
 0x6be   :  { %2829 = vpow2.f32 %v2368_v61 }
 0x6bf   :  { %v2824_v63 = vpop.eup %2823  ;;  %2831 = vpow2.f32 %v2367_v62 }
 0x6c0   :  { %v1393_v0 = vadd.f32 1.0, %v2824_v63 }
 0x6c2   :  { %2833 = vrcp.f32 %v1393_v0 }
 0x6c4   :  { %v2826_v3 = vpop.eup %2825 }
 0x6c5   :  { %v2828_v4 = vpop.eup %2827  ;;  %v1574_v5 = vadd.f32 1.0, %v2826_v3 }
 0x6c6   :  { %v1573_v6 = vadd.f32 1.0, %v2828_v4 }
 0x6c7   :  { %2835 = vrcp.f32 %v1574_v5 }
 0x6c8   :  { %v2830_v8 = vpop.eup %2829  ;;  %2837 = vrcp.f32 %v1573_v6 }
 0x6c9   :  { %v2832_v9 = vpop.eup %2831  ;;  %v1746_v10 = vadd.f32 1.0, %v2830_v8 }
 0x6ca   :  { %v1745_v13 = vadd.f32 1.0, %v2832_v9 }
 0x6cb   :  { %2839 = vrcp.f32 %v1746_v10 }
 0x6cc   :  { %v2834_v14 = vpop.eup %2833  ;;  %2841 = vrcp.f32 %v1745_v13 }
 0x6cd   :  { %v1396_v15 = vadd.f32 %v2834_v14, %v1134_v38 }
 0x6d1   :  { %v2836_v16 = vpop.eup %2835 }
 0x6d2   :  { %v2838_v17 = vpop.eup %2837 }
 0x6d3   :  { %v2689_v18 = vpack.c.bf16 %v2836_v16, %v2838_v17 }
 0x6d5   :  { %v2840_v19 = vpop.eup %2839  ;;  %2691 = vmatpush3.bf16.msk.msra.mxu1 %vm2986_vm5, %v2689_v18 }
 0x6d6   :  { %v2842_v20 = vpop.eup %2841 }
 0x6d7   :  { %v2692_v21 = vpack.c.bf16 %v2840_v19, %v2842_v20 }
 0x6d8   :  { %2587 = vmatmul.mubr.msk.f32.vlgmr.msra.gmra.mrb[16].mxu1 %vm163_vm2, %v3029_v57 }
 0x6d9   :  { %2694 = vmatprep.subr.msk.bf16.mxu1 %vm2986_vm5, %v2692_v21  ;;  %2598 = vmatprep.mubr.msk.f32.mxu1 %vm163_vm2, %v2967_v7 }
 0x6da   :  { %2697 = vmatpush3.bf16.msk.msra.mxu1 %vm2986_vm5, %v2692_v21 }
 0x6db   :  { %2608 = vmatprep.subr.msk.mxu1 %vm62_vm0, %v2377_v22 }
 0x6dd   :  { %2599 = vmatmul.mubr.msk.f32.vlgmr.msra.gmra.mrb[18].mxu1 %vm163_vm2, %v3000_v28 }
 0x6de   :  { %2609 = vmatpush3.msk.msra.mxu1 %vm62_vm0, %v2377_v22  ;;  %2610 = vmatprep.mubr.msk.f32.mxu1 %vm55_vm1, %v2942_v1 }
 0x6df   :  { %2708 = vmatprep.subr.bf16.mxu1 %v2883_v29 }
 0x6e1   :  { %2611 = vmatmul.mubr.msk.f32.vlgmr.msra.gmra.mrb[20].mxu1 %vm55_vm1, %v2947_v2 }
 0x6e2   :  { %2624 = vmatprep.mubr.msk.f32.mxu1 %vm2884_vm6, %v2885_v30 }
 0x7ab   :  { %v1648_v23 = vpop.f32.mrb[16].mxu1 }
 0x7ac   :  { %v1649_v24 = vadd.f32 %v1648_v23, %v3081_v37  ;;  %v2588_v26 = vpop.f32.mrb[17].mxu1 }
 0x7ae   :  { %v2362_v27 = vmul.f32 -1.442695, %v1649_v24 }
 0x7b0   :  { %2843 = vpow2.f32 %v2362_v27  ;;  %v2600_v33 = vpop.f32.mrb[18].mxu1 }
 0x7b1   :  { %v1826_v34 = vadd.f32 %v2600_v33, %v3018_v32  ;;  %v1820_v35 = vpop.f32.mrb[19].mxu1 }
 0x7b2   :  { %v1821_v1 = vadd.f32 %v1820_v35, %v3016_v31 }
 0x7b3   :  { %v2373_v36 = vmul.f32 -1.442695, %v1826_v34 }
 0x7b4   :  { %v2372_v29 = vmul.f32 -1.442695, %v1821_v1  ;;  %v2612_v38 = vpop.f32.mrb[20].mxu1  ;;  %v2267_v1 = vlaneseq }
 0x7b5   :  { %2845 = vpow2.f32 %v2373_v36  ;;  %v1998_v2 = vadd.f32 %v2612_v38, %v2982_v12  ;;  %v1992_v39 = vpop.f32.mrb[21].mxu1 }
 0x7b6   :  { %2847 = vpow2.f32 %v2372_v29  ;;  %v1993_v40 = vadd.f32 %v1992_v39, %v2980_v11  ;;  %v2268_v36 = vshrl.u32 %v2267_v1, 7 }
 0x7b7   :  { %v2382_v41 = vmul.f32 -1.442695, %v1998_v2 }
 0x7b8   :  { %v2381_v42 = vmul.f32 -1.442695, %v1993_v40  ;;  %vm2269_vm9 = vcmp.lt.s32.totalorder %v2268_v36, 3 }
 0x7b9   :  { %2849 = vpow2.f32 %v2382_v41 }
 0x7ba   :  { %v2844_v43 = vpop.eup %2843  ;;  %2851 = vpow2.f32 %v2381_v42 }
 0x7bb   :  { %v1655_v44 = vadd.f32 1.0, %v2844_v43 }
 0x7bd   :  { %2853 = vrcp.f32 %v1655_v44 }
 0x7bf   :  { %v2846_v45 = vpop.eup %2845 }
 0x7c0   :  { %v2848_v46 = vpop.eup %2847  ;;  %v1836_v47 = vadd.f32 1.0, %v2846_v45 }
 0x7c1   :  { %v1835_v48 = vadd.f32 1.0, %v2848_v46 }
 0x7c2   :  { %2855 = vrcp.f32 %v1836_v47 }
 0x7c3   :  { %v2850_v49 = vpop.eup %2849  ;;  %2857 = vrcp.f32 %v1835_v48 }
 0x7c4   :  { %v2852_v50 = vpop.eup %2851  ;;  %v2008_v12 = vadd.f32 1.0, %v2850_v49 }
 0x7c5   :  { %v2007_v51 = vadd.f32 1.0, %v2852_v50 }
 0x7c6   :  { %2859 = vrcp.f32 %v2008_v12 }
 0x7c7   :  { %v2854_v52 = vpop.eup %2853  ;;  %2861 = vrcp.f32 %v2007_v51 }
 0x7c8   :  { %v1658_v11 = vadd.f32 %v2854_v52, %v1396_v15 }
 0x7cc   :  { %v2856_v53 = vpop.eup %2855 }
 0x7cd   :  { %v2858_v54 = vpop.eup %2857 }
 0x7ce   :  { %v2699_v55 = vpack.c.bf16 %v2856_v53, %v2858_v54 }
 0x7d0   :  { %v2860_v56 = vpop.eup %2859  ;;  %2701 = vmatpush3.bf16.msk.msra.mxu0 %vm2986_vm5, %v2699_v55 }
 0x7d1   :  { %v2862_v58 = vpop.eup %2861 }
 0x7d2   :  { %v2702_v59 = vpack.c.bf16 %v2860_v56, %v2862_v58 }
 0x7d3   :  { %2606 = vmatmul.mubr.msk.f32.vlgmr.msra.gmra.mrb[20].mxu0 %vm163_vm2, %v3029_v57 }
 0x7d4   :  { %2704 = vmatprep.subr.msk.bf16.mxu0 %vm2986_vm5, %v2702_v59  ;;  %2617 = vmatprep.mubr.msk.f32.mxu0 %vm163_vm2, %v2967_v7 }
 0x7d5   :  { %2707 = vmatpush3.bf16.msk.msra.mxu0 %vm2986_vm5, %v2702_v59 }
 0x7d6   :  { %2627 = vmatprep.subr.mxu0 %v2885_v30 }
 0x7d8   :  { %2618 = vmatmul.mubr.msk.f32.vlgmr.msra.gmra.mrb[22].mxu0 %vm163_vm2, %v3000_v28 }
 0x7d9   :  { %2629 = vmatprep.mubr.msk.f32.mxu0 %vm2884_vm6, %v2885_v30 }
 0x8a6   :  { %v1910_v60 = vpop.f32.mrb[20].mxu0 }
 0x8a7   :  { %v1911_v61 = vadd.f32 %v1910_v60, %v3081_v37  ;;  %v2607_v62 = vpop.f32.mrb[21].mxu0 }
 0x8a9   :  { %v2376_v63 = vmul.f32 -1.442695, %v1911_v61 }
 0x8ab   :  { %2863 = vpow2.f32 %v2376_v63  ;;  %v2619_v0 = vpop.f32.mrb[22].mxu0 }
 0x8ac   :  { %v2088_v7 = vadd.f32 %v2619_v0, %v3018_v32  ;;  %v2082_v3 = vpop.f32.mrb[23].mxu0 }
 0x8ad   :  { %v2083_v4 = vadd.f32 %v2082_v3, %v3016_v31 }
 0x8ae   :  { %v2387_v5 = vmul.f32 -1.442695, %v2088_v7 }
 0x8af   :  { %v2386_v6 = vmul.f32 -1.442695, %v2083_v4 }
 0x8b0   :  { %2865 = vpow2.f32 %v2387_v5 }
 0x8b1   :  { %2867 = vpow2.f32 %v2386_v6 }
 0x8b5   :  { %v2864_v28 = vpop.eup %2863 }
 0x8b6   :  { %v1917_v8 = vadd.f32 1.0, %v2864_v28 }
 0x8b8   :  { %2869 = vrcp.f32 %v1917_v8 }
 0x8ba   :  { %v2866_v30 = vpop.eup %2865 }
 0x8bb   :  { %v2868_v9 = vpop.eup %2867  ;;  %v2098_v10 = vadd.f32 1.0, %v2866_v30 }
 0x8bc   :  { %v2097_v13 = vadd.f32 1.0, %v2868_v9 }
 0x8bd   :  { %2871 = vrcp.f32 %v2098_v10 }
 0x8be   :  { %2873 = vrcp.f32 %v2097_v13 }
 0x8c2   :  { %v2870_v14 = vpop.eup %2869 }
 0x8c3   :  { %v1920_v15 = vadd.f32 %v2870_v14, %v1658_v11 }
 0x8c7   :  { %v2872_v16 = vpop.eup %2871 }
 0x8c8   :  { %v2874_v32 = vpop.eup %2873 }
 0x8c9   :  { %v2709_v17 = vpack.c.bf16 %v2872_v16, %v2874_v32 }
 0x8cb   :  { %2711 = vmatpush3.bf16.msk.msra.mxu1 %vm2986_vm5, %v2709_v17 }
 0x8ce   :  { %2625 = vmatmul.mubr.msk.f32.vlgmr.msra.gmra.mrb[22].mxu1 %vm163_vm2, %v3029_v57  ;;  %v2187_v57 = vpop.permute.xlu1 %2186 }
 0x9a1   :  { %v2172_v31 = vpop.f32.mrb[22].mxu1 }
 0x9a2   :  { %v2173_v18 = vadd.f32 %v2172_v31, %v3081_v37  ;;  %v2626_v19 = vpop.f32.mrb[23].mxu1 }
 0x9a4   :  { %v2390_v20 = vmul.f32 -1.442695, %v2173_v18 }
 0x9a6   :  { %2875 = vpow2.f32 %v2390_v20 }
 0x9b0   :  { %v2876_v21 = vpop.eup %2875 }
 0x9b1   :  { %v2179_v22 = vadd.f32 1.0, %v2876_v21 }
 0x9b3   :  { %2877 = vrcp.f32 %v2179_v22 }
 0x9bd   :  { %v2878_v23 = vpop.eup %2877 }
 0x9be   :  { %v2182_v24 = vadd.f32 %v2878_v23, %v1920_v15 }
 0x9c0   :  { %v2183_v26 = vmul.f32 0.125, %v2182_v24 }
 0x9c2   :  { %2628 = vmatpush3.msk.msra.mxu0 %vm2193_vm7, %v2183_v26 }
 0x9c3   :  { %2630 = vmatmul.mubr.msk.f32.vlgmr.msra.gmra.mrb[24].mxu0 %vm2189_vm8, %v42_v25 }
 0xa96   :  { %v2263_v27 = vpop.f32.mrb[24].mxu0 }
 0xa97   :  { %v2264_v37 = vadd.f32 %v2263_v27, %v2187_v57  ;;  %v2631_v33 = vpop.f32.mrb[25].mxu0 }
 0xa99   :  { %v2270_v34 = vmul.f32 0.5, %v2264_v37 }
 0xa9b   :  { %v2271_v35 = vmul.f32 1.442695, %v2270_v34 }
 0xa9d   :  { %2879 = vpow2.f32 %v2271_v35 }
 0xaa7   :  { %v2880_v29 = vpop.eup %2879 }
 0xaa8   :  { %v2273_v38 = vsel %vm2269_vm9, %v2264_v37, %v2880_v29 }
 0xaa9   :  { %2275 = vst.msk [vmem:[%s3243_s9] sm:$0x3f] %vm2274_vm10, %v2273_v38 }

</bundles_post_ra>
